<compile_context>
chip_gen: v7x
topology: tpu7x:2x2x1
jax: 0.10.0
libtpu: 0.0.40
codegen_flags: <defaults>
</compile_context>

<pallas_src>
import functools

import jax
import jax.numpy as jnp
from jax.experimental import pallas as pl
from jax.experimental.pallas import tpu as pltpu

IN_F = 3
HID = 160
OUT_F = 1


def _round_up(n: int, m: int) -> int:
    return ((n + m - 1) // m) * m


def mlp_kernel(xT_ref, w1_ref, b1_ref, w2_ref, b2_ref, o_ref):
    # xT_ref: (3, TILE_B)   w1_ref: (160, 3)   b1_ref: (160, 1)
    # w2_ref: (1, 160)      b2_ref: (1, 1)     o_ref:  (1, TILE_B)
    xT = xT_ref[...]
    # fc1: (160,3) @ (3,TILE_B) -> (160, TILE_B)   (MXU, lane-dense N)
    h = jnp.dot(w1_ref[...], xT, preferred_element_type=jnp.float32)
    h = jnp.maximum(h + b1_ref[...], 0.0)  # bias broadcast + ReLU on VPU
    # fc2: (1,160) @ (160,TILE_B) -> (1, TILE_B)
    y = jnp.dot(w2_ref[...], h, preferred_element_type=jnp.float32)
    o_ref[...] = (y + b2_ref[...]).astype(o_ref.dtype)


@functools.partial(jax.jit, static_argnames=("tile_b",))
def mynn_forward(x, w1, b1, w2, b2, *, tile_b=1024):
    """Forward pass of MyNN.

    x : (B, 3) float32  (PyTorch nn.Linear input layout)
    w1: (160, 3)  b1: (160,)   -- fc1 params, PyTorch (out, in) layout
    w2: (1, 160)  b2: (1,)     -- fc2 params
    returns (B, 1) float32
    """
    B = x.shape[0]
    # Lane-dense tile: multiple of 128, capped at tile_b, no bigger than needed.
    tb = min(tile_b, _round_up(B, 128))
    Bp = _round_up(B, tb)
    num_tiles = Bp // tb

    # Feature-major layout + pad batch to a multiple of the tile (glue, cheap XLA ops).
    xT = jnp.pad(x.T, ((0, 0), (0, Bp - B)))          # (3, Bp)
    b1_col = b1.reshape(HID, 1)                       # (160, 1)
    b2_col = b2.reshape(OUT_F, 1)                     # (1, 1)

    weight_bytes = (HID * IN_F + HID + OUT_F * HID + OUT_F) * 4
    cost = pl.CostEstimate(
        flops=2 * Bp * IN_F * HID + 2 * Bp * HID * OUT_F,
        transcendentals=0,
        bytes_accessed=Bp * IN_F * 4 + Bp * OUT_F * 4 + weight_bytes,
    )

    out = pl.pallas_call(
        mlp_kernel,
        out_shape=jax.ShapeDtypeStruct((OUT_F, Bp), jnp.float32),
        grid=(num_tiles,),
        in_specs=[
            pl.BlockSpec((IN_F, tb), lambda i: (0, i)),      # x tile, streamed
            pl.BlockSpec((HID, IN_F), lambda i: (0, 0)),     # w1, VMEM-resident
            pl.BlockSpec((HID, 1), lambda i: (0, 0)),        # b1, VMEM-resident
            pl.BlockSpec((OUT_F, HID), lambda i: (0, 0)),    # w2, VMEM-resident
            pl.BlockSpec((OUT_F, 1), lambda i: (0, 0)),      # b2, VMEM-resident
        ],
        out_specs=pl.BlockSpec((OUT_F, tb), lambda i: (0, i)),  # lane-dense output slab
        compiler_params=pltpu.CompilerParams(
            dimension_semantics=("parallel",),               # shard batch tiles across TCs (v7x)
        ),
        cost_estimate=cost,
    )(xT, w1, b1_col, w2, b2_col)

    # Back to PyTorch output layout (B, 1), dropping batch padding.
    return out[:, :B].T


def reference_forward(x, w1, b1, w2, b2):
    h = jnp.maximum(x @ w1.T + b1, 0.0)
    return h @ w2.T + b2


if __name__ == "__main__":
    key = jax.random.PRNGKey(0)
    k_x, k_w1, k_b1, k_w2, k_b2, k_x2 = jax.random.split(key, 6)

    # Parameters (nn.Linear shapes): fc1 weight (160,3)/bias (160,), fc2 weight (1,160)/bias (1,)
    w1 = jax.random.uniform(k_w1, (HID, IN_F), jnp.float32, minval=-0.5, maxval=0.5)
    b1 = jax.random.uniform(k_b1, (HID,), jnp.float32, minval=-0.5, maxval=0.5)
    w2 = jax.random.uniform(k_w2, (OUT_F, HID), jnp.float32, minval=-0.1, maxval=0.1)
    b2 = jax.random.uniform(k_b2, (OUT_F,), jnp.float32, minval=-0.1, maxval=0.1)

    # Small batch (single tile).
    B = 8
    x = jax.random.normal(k_x, (B, IN_F), dtype=jnp.float32)
    y = mynn_forward(x, w1, b1, w2, b2)
    jax.block_until_ready(y)
    y_ref = reference_forward(x, w1, b1, w2, b2)
    assert y.shape == (B, OUT_F)
    assert jnp.allclose(y, y_ref, atol=1e-5, rtol=1e-5), "mismatch vs reference (B=8)"

    # Ragged batch exercising multiple grid steps + tail padding.
    B2 = 300
    x2 = jax.random.normal(k_x2, (B2, IN_F), dtype=jnp.float32)
    y2 = mynn_forward(x2, w1, b1, w2, b2, tile_b=128)
    jax.block_until_ready(y2)
    y2_ref = reference_forward(x2, w1, b1, w2, b2)
    assert y2.shape == (B2, OUT_F)
    assert jnp.allclose(y2, y2_ref, atol=1e-5, rtol=1e-5), "mismatch vs reference (B=300)"

    print("KERNEL_OK")
</pallas_src>

<mosaic_0001>
module attributes {stable_mosaic.version = 11 : i64} {
  func.func @mlp_kernel(%arg0: i32, %arg1: memref<3x128xf32, #tpu.memory_space<vmem>>, %arg2: memref<160x3xf32, #tpu.memory_space<vmem>>, %arg3: memref<160x1xf32, #tpu.memory_space<vmem>>, %arg4: memref<1x160xf32, #tpu.memory_space<vmem>>, %arg5: memref<1x1xf32, #tpu.memory_space<vmem>>, %arg6: memref<1x128xf32, #tpu.memory_space<vmem>>) attributes {dimension_semantics = [#tpu.dimension_semantics<parallel>], iteration_bounds = array<i64: 1>, scalar_prefetch = 0 : i64, scratch_operands = 0 : i64, tpu.core_type = #tpu.core_type<tc>, window_params = [{transform_indices = @transform_0, window_bounds = array<i64: 3, 128>}, {pipeline_mode = #tpu.pipeline_mode<synchronous>, transform_indices = @transform_1, window_bounds = array<i64: 160, 3>}, {pipeline_mode = #tpu.pipeline_mode<synchronous>, transform_indices = @transform_2, window_bounds = array<i64: 160, 1>}, {pipeline_mode = #tpu.pipeline_mode<synchronous>, transform_indices = @transform_3, window_bounds = array<i64: 1, 160>}, {pipeline_mode = #tpu.pipeline_mode<synchronous>, transform_indices = @transform_4, window_bounds = array<i64: 1, 1>}, {transform_indices = @transform_5, window_bounds = array<i64: 1, 128>}]} {
    %c0 = arith.constant 0 : index
    %c0_0 = arith.constant 0 : index
    %0 = vector.load %arg1[%c0, %c0_0] : memref<3x128xf32, #tpu.memory_space<vmem>>, vector<3x128xf32>
    %c0_1 = arith.constant 0 : index
    %c0_2 = arith.constant 0 : index
    %1 = vector.load %arg2[%c0_1, %c0_2] : memref<160x3xf32, #tpu.memory_space<vmem>>, vector<160x3xf32>
    %cst = arith.constant dense<0.000000e+00> : vector<160x128xf32>
    %2 = tpu.matmul %1, %0, %cst {dimension_numbers = #tpu.dot_dimension_numbers<[1], [0], [0], [1], [0, 0, 1, 1], [], []>} : vector<160x3xf32>, vector<3x128xf32>, vector<160x128xf32> -> vector<160x128xf32>
    %c0_3 = arith.constant 0 : index
    %c0_4 = arith.constant 0 : index
    %3 = vector.load %arg3[%c0_3, %c0_4] : memref<160x1xf32, #tpu.memory_space<vmem>>, vector<160x1xf32>
    %4 = vector.broadcast %3 : vector<160x1xf32> to vector<160x128xf32>
    %5 = arith.addf %2, %4 : vector<160x128xf32>
    %cst_5 = arith.constant 0.000000e+00 : f32
    %6 = vector.broadcast %cst_5 : f32 to vector<160x128xf32>
    %7 = arith.maximumf %5, %6 : vector<160x128xf32>
    %c0_6 = arith.constant 0 : index
    %c0_7 = arith.constant 0 : index
    %8 = vector.load %arg4[%c0_6, %c0_7] : memref<1x160xf32, #tpu.memory_space<vmem>>, vector<1x160xf32>
    %cst_8 = arith.constant dense<0.000000e+00> : vector<1x128xf32>
    %9 = tpu.matmul %8, %7, %cst_8 {dimension_numbers = #tpu.dot_dimension_numbers<[1], [0], [0], [1], [0, 0, 1, 1], [], []>} : vector<1x160xf32>, vector<160x128xf32>, vector<1x128xf32> -> vector<1x128xf32>
    %c0_9 = arith.constant 0 : index
    %c0_10 = arith.constant 0 : index
    %10 = vector.load %arg5[%c0_9, %c0_10] : memref<1x1xf32, #tpu.memory_space<vmem>>, vector<1x1xf32>
    %11 = vector.broadcast %10 : vector<1x1xf32> to vector<1x128xf32>
    %12 = arith.addf %9, %11 : vector<1x128xf32>
    %c0_11 = arith.constant 0 : index
    %c0_12 = arith.constant 0 : index
    %13 = vector.load %arg6[%c0_11, %c0_12] : memref<1x128xf32, #tpu.memory_space<vmem>>, vector<1x128xf32>
    tpu.vector_store %arg6[%c0_11, %c0_12], %12 {strides = array<i32>} : memref<1x128xf32, #tpu.memory_space<vmem>>, vector<1x128xf32>,
    return
  }
  func.func @transform_0(%arg0: i32) -> (i32, i32) {
    %c0_i32 = arith.constant 0 : i32
    %c0_i32_0 = arith.constant 0 : i32
    return %c0_i32, %arg0 : i32, i32
  }
  func.func @transform_1(%arg0: i32) -> (i32, i32) {
    %c0_i32 = arith.constant 0 : i32
    %c0_i32_0 = arith.constant 0 : i32
    %c0_i32_1 = arith.constant 0 : i32
    return %c0_i32, %c0_i32_0 : i32, i32
  }
  func.func @transform_2(%arg0: i32) -> (i32, i32) {
    %c0_i32 = arith.constant 0 : i32
    %c0_i32_0 = arith.constant 0 : i32
    %c0_i32_1 = arith.constant 0 : i32
    return %c0_i32, %c0_i32_0 : i32, i32
  }
  func.func @transform_3(%arg0: i32) -> (i32, i32) {
    %c0_i32 = arith.constant 0 : i32
    %c0_i32_0 = arith.constant 0 : i32
    %c0_i32_1 = arith.constant 0 : i32
    return %c0_i32, %c0_i32_0 : i32, i32
  }
  func.func @transform_4(%arg0: i32) -> (i32, i32) {
    %c0_i32 = arith.constant 0 : i32
    %c0_i32_0 = arith.constant 0 : i32
    %c0_i32_1 = arith.constant 0 : i32
    return %c0_i32, %c0_i32_0 : i32, i32
  }
  func.func @transform_5(%arg0: i32) -> (i32, i32) {
    %c0_i32 = arith.constant 0 : i32
    %c0_i32_0 = arith.constant 0 : i32
    return %c0_i32, %arg0 : i32, i32
  }
}

</mosaic_0001>

<bundles_post_ra>
// kernel: mynn_forward.1
= control target key start
LH: loop header
LB: loop body
LE: loop exit
PB: predicated region body
PF: predicated region fallthrough
CT: control target
= control target key end

     0   :  { %vm224_vm0 = vcmask 1042432   ;;  %vm163_vm1 = vcmask 23552   ;;  %v621_v3 = vmov 0   ;;  %v622_v44 = vmov 0.0|0.0   ;;  %s823_s0 = inlined_call_operand.vmem [shape: f32[3,128], index: 0, kind: input, shape index: {}]   ;;  %s824_s1 = inlined_call_operand.vmem [shape: f32[160,3], index: 1, kind: input, shape index: {}]   ;;  %s825_s4 = inlined_call_operand.<no memory space> [shape: f32[1,1], index: 4, kind: input, shape index: {}]   ;;  %s826_s2 = inlined_call_operand.vmem [shape: f32[160,1], index: 2, kind: input, shape index: {}]   ;;  %s827_s3 = inlined_call_operand.vmem [shape: f32[1,160], index: 3, kind: input, shape index: {}]   ;;  %s828_s5 = inlined_call_operand.vmem [shape: f32[1,128], index: 5, kind: output, shape index: {}]  }
   0x1   :  { %v22_v0 = vld [vmem:[%s823_s0] sm:$0x7]  ;;  %v24_v2 = vld [vmem:[%s824_s1 + $0x8] sm:$0xff]  ;;  %619 = vset.pattern.permute.xlu0 %v621_v3  ;;  %620 = vset.pattern.permute.xlu1 %v621_v3  ;;  %v10_v4 = vstv %s825_s4  ;;  %v25_v5 = vld [vmem:[%s824_s1 + $0x10] sm:$0xff]  ;;  %v420_v45 = vlaneseq  ;;  %vm434_vm2 = vcmask 261120  }
   0x2   :  { %v23_v1 = vld [vmem:[%s824_s1] sm:$0xff]  ;;  %555 = vmatprep.subr.msk.mxu0 %vm224_vm0, %v22_v0  ;;  %11 = vst [vmem:[#allocation2] sm:$0x1] %v10_v4  ;;  %v26_v6 = vld [vmem:[%s824_s1 + $0x18] sm:$0xff]  ;;  %v45_v9 = vld [vmem:[%s826_s2 + $0x10] sm:$0xff]  ;;  %587 = vmatprep.subr.bf16.mxu1 %v622_v44 }
   0x3   :  { %557 = vmatprep.mubr.msk.f32.mxu0 %vm163_vm1, %v23_v1  ;;  %556 = vmatpush3.msk.msra.mxu0 %vm224_vm0, %v22_v0  ;;  %v27_v7 = vld [vmem:[%s824_s1 + $0x20] sm:$0xff]  ;;  %v28_v10 = vld [vmem:[%s824_s1 + $0x28] sm:$0xff]  ;;  %v29_v11 = vld [vmem:[%s824_s1 + $0x30] sm:$0xff]  ;;  %v800_v46 = vshrl.u32 %v420_v45, 7 }
   0x4   :  { %558 = vmatmul.mubr.msk.f32.vlgmr.msra.gmra.mrb[0].mxu0 %vm163_vm1, %v24_v2  ;;  %v43_v8 = vld [vmem:[%s826_s2] sm:$0xff]  ;;  %v44_v12 = vld [vmem:[%s826_s2 + $0x8] sm:$0xff]  ;;  %75 = vperm.xlu1 %620, %v45_v9   ;;  %v46_v13 = vld [vmem:[%s826_s2 + $0x18] sm:$0xff] }
   0x5   :  { %560 = vmatprep.mubr.msk.f32.mxu0 %vm163_vm1, %v25_v5  ;;  %65 = vperm.xlu0 %619, %v43_v8   ;;  %v30_v14 = vld [vmem:[%s824_s1 + $0x38] sm:$0xff]  ;;  %v31_v15 = vld [vmem:[%s824_s1 + $0x40] sm:$0xff]  ;;  %v48_v17 = vld [vmem:[%s826_s2 + $0x28] sm:$0xff]  ;;  %v431_v47 = vsub.s32 1, %v800_v46 }
   0x6   :  { %v47_v16 = vld [vmem:[%s826_s2 + $0x20] sm:$0xff]  ;;  %v32_v18 = vld [vmem:[%s824_s1 + $0x48] sm:$0xff]  ;;  %v33_v19 = vld [vmem:[%s824_s1 + $0x50] sm:$0xff] }
   0x7   :  { %v49_v20 = vld [vmem:[%s826_s2 + $0x30] sm:$0xff]  ;;  %v50_v21 = vld [vmem:[%s826_s2 + $0x38] sm:$0xff]  ;;  %v35_v23 = vld [vmem:[%s824_s1 + $0x60] sm:$0xff] }
   0x8   :  { %561 = vmatmul.mubr.msk.f32.gmra.mrb[2].mxu0 %vm163_vm1, %v26_v6  ;;  %80 = vperm.xlu1 %620, %v46_v13   ;;  %v34_v22 = vld [vmem:[%s824_s1 + $0x58] sm:$0xff]  ;;  %v51_v24 = vld [vmem:[%s826_s2 + $0x40] sm:$0xff]  ;;  %v52_v25 = vld [vmem:[%s826_s2 + $0x48] sm:$0xff] }
   0x9   :  { %563 = vmatprep.mubr.msk.f32.mxu0 %vm163_vm1, %v27_v7  ;;  %70 = vperm.xlu0 %619, %v44_v12   ;;  %v36_v26 = vld [vmem:[%s824_s1 + $0x68] sm:$0xff]  ;;  %v37_v27 = vld [vmem:[%s824_s1 + $0x70] sm:$0xff]  ;;  %v54_v29 = vld [vmem:[%s826_s2 + $0x58] sm:$0xff] }
   0xa   :  { %v53_v28 = vld [vmem:[%s826_s2 + $0x50] sm:$0xff]  ;;  %v38_v30 = vld [vmem:[%s824_s1 + $0x78] sm:$0xff]  ;;  %v39_v31 = vld [vmem:[%s824_s1 + $0x80] sm:$0xff] }
   0xb   :  { %v55_v32 = vld [vmem:[%s826_s2 + $0x60] sm:$0xff]  ;;  %v56_v33 = vld [vmem:[%s826_s2 + $0x68] sm:$0xff]  ;;  %v41_v35 = vld [vmem:[%s824_s1 + $0x90] sm:$0xff] }
   0xc   :  { %564 = vmatmul.mubr.msk.f32.gmra.mrb[4].mxu0 %vm163_vm1, %v28_v10  ;;  %90 = vperm.xlu1 %620, %v48_v17   ;;  %v40_v34 = vld [vmem:[%s824_s1 + $0x88] sm:$0xff]  ;;  %v57_v36 = vld [vmem:[%s826_s2 + $0x70] sm:$0xff]  ;;  %v58_v37 = vld [vmem:[%s826_s2 + $0x78] sm:$0xff] }
   0xd   :  { %566 = vmatprep.mubr.msk.f32.mxu0 %vm163_vm1, %v29_v11  ;;  %85 = vperm.xlu0 %619, %v47_v16   ;;  %v42_v38 = vld [vmem:[%s824_s1 + $0x98] sm:$0xff]  ;;  %v59_v39 = vld [vmem:[%s826_s2 + $0x80] sm:$0xff]  ;;  %v60_v40 = vld [vmem:[%s826_s2 + $0x88] sm:$0xff] }
   0xe   :  { %v61_v41 = vld [vmem:[%s826_s2 + $0x90] sm:$0xff]  ;;  %v62_v42 = vld [vmem:[%s826_s2 + $0x98] sm:$0xff]  ;;  %v414_v43 = vld [vmem:[#allocation2] sm:$0x1] }
   0xf   :  { %v806_v48 = vld [vmem:[%s827_s3] sm:$0x3] }
  0x10   :  { %567 = vmatmul.mubr.msk.f32.gmra.mrb[6].mxu0 %vm163_vm1, %v30_v14  ;;  %100 = vperm.xlu1 %620, %v50_v21   ;;  %v432_v49 = vrot.slane %v806_v48, %v431_v47 }
  0x11   :  { %569 = vmatprep.mubr.msk.f32.mxu0 %vm163_vm1, %v31_v15  ;;  %95 = vperm.xlu0 %619, %v49_v20  }
  0x12   :  { %533 = vmatprep.mubr.msk.f32.mxu1 %vm434_vm2, %v432_v49 }
  0x14   :  { %570 = vmatmul.mubr.msk.f32.gmra.mrb[8].mxu0 %vm163_vm1, %v32_v18  ;;  %110 = vperm.xlu1 %620, %v52_v25  }
  0x15   :  { %572 = vmatprep.mubr.msk.f32.mxu0 %vm163_vm1, %v33_v19  ;;  %105 = vperm.xlu0 %619, %v51_v24  }
  0x18   :  { %573 = vmatmul.mubr.msk.f32.gmra.mrb[10].mxu0 %vm163_vm1, %v34_v22  ;;  %120 = vperm.xlu1 %620, %v54_v29  }
  0x19   :  { %575 = vmatprep.mubr.msk.f32.mxu0 %vm163_vm1, %v35_v23  ;;  %115 = vperm.xlu0 %619, %v53_v28  }
  0x1c   :  { %576 = vmatmul.mubr.msk.f32.gmra.mrb[12].mxu0 %vm163_vm1, %v36_v26  ;;  %130 = vperm.xlu1 %620, %v56_v33  }
  0x1d   :  { %578 = vmatprep.mubr.msk.f32.mxu0 %vm163_vm1, %v37_v27  ;;  %125 = vperm.xlu0 %619, %v55_v32  }
  0x20   :  { %579 = vmatmul.mubr.msk.f32.gmra.mrb[14].mxu0 %vm163_vm1, %v38_v30  ;;  %140 = vperm.xlu1 %620, %v58_v37  }
  0x21   :  { %581 = vmatprep.mubr.msk.f32.mxu0 %vm163_vm1, %v39_v31  ;;  %135 = vperm.xlu0 %619, %v57_v36  }
  0x24   :  { %582 = vmatmul.mubr.msk.f32.gmra.mrb[16].mxu0 %vm163_vm1, %v40_v34  ;;  %150 = vperm.xlu1 %620, %v60_v40  }
  0x25   :  { %584 = vmatprep.mubr.msk.f32.mxu0 %vm163_vm1, %v41_v35  ;;  %145 = vperm.xlu0 %619, %v59_v39  }
  0x28   :  { %585 = vmatmul.mubr.msk.f32.gmra.mrb[18].mxu0 %vm163_vm1, %v42_v38  ;;  %160 = vperm.xlu1 %620, %v62_v42  }
  0x29   :  { %155 = vperm.xlu0 %619, %v61_v41  }
  0x2d   :  { %417 = vperm.xlu0 %619, %v414_v43  }
  0x83   :  { %v76_v50 = vpop.permute.xlu1 %75 }
  0x84   :  { %v66_v51 = vpop.permute.xlu0 %65 }
  0x87   :  { %v81_v52 = vpop.permute.xlu1 %80 }
  0x88   :  { %v71_v53 = vpop.permute.xlu0 %70 }
  0x8b   :  { %v91_v54 = vpop.permute.xlu1 %90 }
  0x8c   :  { %v86_v55 = vpop.permute.xlu0 %85 }
  0x8f   :  { %v101_v56 = vpop.permute.xlu1 %100 }
  0x90   :  { %v96_v58 = vpop.permute.xlu0 %95 }
  0x93   :  { %v111_v3 = vpop.permute.xlu1 %110 }
  0x94   :  { %v106_v6 = vpop.permute.xlu0 %105 }
  0x97   :  { %v121_v15 = vpop.permute.xlu1 %120 }
  0x98   :  { %v116_v18 = vpop.permute.xlu0 %115 }
  0x9b   :  { %v131_v28 = vpop.permute.xlu1 %130 }
  0x9c   :  { %v126_v31 = vpop.permute.xlu0 %125 }
  0x9f   :  { %v141_v40 = vpop.permute.xlu1 %140 }
  0xa0   :  { %v136_v43 = vpop.permute.xlu0 %135 }
  0xd7   :  { %v559_v57 = vpop.f32.mrb[0].mxu0 }
  0xd8   :  { %v300_v59 = vadd.f32 %v559_v57, %v71_v53  ;;  %v294_v60 = vpop.f32.mrb[1].mxu0 }
  0xd9   :  { %v295_v61 = vadd.f32 %v294_v60, %v66_v51 }
  0xda   :  { %v394_v62 = vmax.f32 %v300_v59, 0.0  ;;  %v146_v59 = vpop.permute.xlu0 %145 }
  0xdb   :  { %v393_v63 = vmax.f32 %v295_v61, 0.0  ;;  %v562_v0 = vpop.f32.mrb[2].mxu0 }
  0xdc   :  { %v310_v1 = vadd.f32 %v562_v0, %v81_v52  ;;  %v304_v2 = vpop.f32.mrb[3].mxu0 }
  0xdd   :  { %v305_v4 = vadd.f32 %v304_v2, %v76_v50  ;;  %v588_v5 = vpack.c.bf16 %v394_v62, %v393_v63 }
  0xde   :  { %v396_v7 = vmax.f32 %v310_v1, 0.0 }
  0xdf   :  { %v395_v8 = vmax.f32 %v305_v4, 0.0  ;;  %v565_v9 = vpop.f32.mrb[4].mxu0  ;;  %589 = vmatpush1.bf16.msra.mxu1 %v588_v5 }
  0xe0   :  { %v320_v10 = vadd.f32 %v565_v9, %v91_v54  ;;  %v314_v11 = vpop.f32.mrb[5].mxu0  ;;  %590 = vmatprep.subr.bf16.mxu1 %v622_v44 }
  0xe1   :  { %v591_v12 = vpack.c.bf16 %v396_v7, %v395_v8  ;;  %v315_v13 = vadd.f32 %v314_v11, %v86_v55  ;;  %v156_v7 = vpop.permute.xlu0 %155 }
  0xe2   :  { %v398_v14 = vmax.f32 %v320_v10, 0.0 }
  0xe3   :  { %v397_v16 = vmax.f32 %v315_v13, 0.0  ;;  %v568_v17 = vpop.f32.mrb[6].mxu0  ;;  %592 = vmatpush1.bf16.msra.mxu1 %v591_v12 }
  0xe4   :  { %v330_v19 = vadd.f32 %v568_v17, %v101_v56  ;;  %v324_v20 = vpop.f32.mrb[7].mxu0  ;;  %593 = vmatprep.subr.bf16.mxu1 %v622_v44  ;;  %v151_v56 = vpop.permute.xlu1 %150 }
  0xe5   :  { %v594_v21 = vpack.c.bf16 %v398_v14, %v397_v16  ;;  %v325_v22 = vadd.f32 %v324_v20, %v96_v58  ;;  %v422_v14 = vsub.s32 0, %v800_v46  ;;  %v418_v17 = vpop.permute.xlu0 %417 }
  0xe6   :  { %v400_v23 = vmax.f32 %v330_v19, 0.0 }
  0xe7   :  { %v399_v24 = vmax.f32 %v325_v22, 0.0  ;;  %v571_v25 = vpop.f32.mrb[8].mxu0  ;;  %595 = vmatpush1.bf16.msra.mxu1 %v594_v21  ;;  %v428_v16 = vrot.slane %v806_v48, %v422_v14 }
  0xe8   :  { %v340_v26 = vadd.f32 %v571_v25, %v111_v3  ;;  %v334_v27 = vpop.f32.mrb[9].mxu0  ;;  %596 = vmatprep.subr.bf16.mxu1 %v622_v44  ;;  %v161_v4 = vpop.permute.xlu1 %160 }
  0xe9   :  { %v597_v29 = vpack.c.bf16 %v400_v23, %v399_v24  ;;  %v335_v30 = vadd.f32 %v334_v27, %v106_v6 }
  0xea   :  { %v402_v32 = vmax.f32 %v340_v26, 0.0 }
  0xeb   :  { %v401_v33 = vmax.f32 %v335_v30, 0.0  ;;  %v574_v34 = vpop.f32.mrb[10].mxu0  ;;  %598 = vmatpush1.bf16.msra.mxu1 %v597_v29 }
  0xec   :  { %v350_v35 = vadd.f32 %v574_v34, %v121_v15  ;;  %v344_v36 = vpop.f32.mrb[11].mxu0  ;;  %599 = vmatprep.subr.bf16.mxu1 %v622_v44 }
  0xed   :  { %v600_v37 = vpack.c.bf16 %v402_v32, %v401_v33  ;;  %v345_v38 = vadd.f32 %v344_v36, %v116_v18  ;;  %v423_v18 = vrot.slane %v418_v17, %v422_v14 }
  0xee   :  { %v404_v39 = vmax.f32 %v350_v35, 0.0 }
  0xef   :  { %v403_v41 = vmax.f32 %v345_v38, 0.0  ;;  %v577_v42 = vpop.f32.mrb[12].mxu0  ;;  %601 = vmatpush1.bf16.msra.mxu1 %v600_v37 }
  0xf0   :  { %v360_v45 = vadd.f32 %v577_v42, %v131_v28  ;;  %v354_v47 = vpop.f32.mrb[13].mxu0  ;;  %602 = vmatprep.subr.bf16.mxu1 %v622_v44 }
  0xf1   :  { %v603_v49 = vpack.c.bf16 %v404_v39, %v403_v41  ;;  %v355_v50 = vadd.f32 %v354_v47, %v126_v31 }
  0xf2   :  { %v406_v51 = vmax.f32 %v360_v45, 0.0 }
  0xf3   :  { %v405_v52 = vmax.f32 %v355_v50, 0.0  ;;  %v580_v53 = vpop.f32.mrb[14].mxu0  ;;  %604 = vmatpush1.bf16.msra.mxu1 %v603_v49 }
  0xf4   :  { %v370_v54 = vadd.f32 %v580_v53, %v141_v40  ;;  %v364_v55 = vpop.f32.mrb[15].mxu0  ;;  %605 = vmatprep.subr.bf16.mxu1 %v622_v44 }
  0xf5   :  { %v606_v57 = vpack.c.bf16 %v406_v51, %v405_v52  ;;  %v365_v58 = vadd.f32 %v364_v55, %v136_v43 }
  0xf6   :  { %v408_v60 = vmax.f32 %v370_v54, 0.0 }
  0xf7   :  { %v407_v61 = vmax.f32 %v365_v58, 0.0  ;;  %v583_v62 = vpop.f32.mrb[16].mxu0  ;;  %607 = vmatpush1.bf16.msra.mxu1 %v606_v57 }
  0xf8   :  { %v380_v63 = vadd.f32 %v583_v62, %v151_v56  ;;  %v374_v0 = vpop.f32.mrb[17].mxu0  ;;  %608 = vmatprep.subr.bf16.mxu1 %v622_v44 }
  0xf9   :  { %v609_v1 = vpack.c.bf16 %v408_v60, %v407_v61  ;;  %v375_v2 = vadd.f32 %v374_v0, %v146_v59 }
  0xfa   :  { %v410_v3 = vmax.f32 %v380_v63, 0.0 }
  0xfb   :  { %v409_v5 = vmax.f32 %v375_v2, 0.0  ;;  %v586_v6 = vpop.f32.mrb[18].mxu0  ;;  %610 = vmatpush1.bf16.msra.mxu1 %v609_v1 }
  0xfc   :  { %v390_v8 = vadd.f32 %v586_v6, %v161_v4  ;;  %v384_v9 = vpop.f32.mrb[19].mxu0  ;;  %611 = vmatprep.subr.bf16.mxu1 %v622_v44 }
  0xfd   :  { %v612_v10 = vpack.c.bf16 %v410_v3, %v409_v5  ;;  %v385_v11 = vadd.f32 %v384_v9, %v156_v7 }
  0xfe   :  { %v412_v12 = vmax.f32 %v390_v8, 0.0 }
  0xff   :  { %v411_v13 = vmax.f32 %v385_v11, 0.0  ;;  %613 = vmatpush1.bf16.msra.mxu1 %v612_v10 }
 0x100   :  { %614 = vmatprep.subr.bf16.mxu1 %v622_v44 }
 0x101   :  { %v615_v15 = vpack.c.bf16 %v412_v12, %v411_v13 }
 0x103   :  { %616 = vmatpush1.bf16.msra.mxu1 %v615_v15 }
 0x106   :  { %502 = vmatmul.mubr.f32.vlgmr.msra.gmra.mrb[0].mxu1 %v428_v16 }
 0x1d9   :  { %v503_v19 = vpop.f32.mrb[0].mxu1 }
 0x1da   :  { %v504_v20 = vadd.f32 %v503_v19, %v423_v18  ;;  %v505_v21 = vpop.f32.mrb[1].mxu1 }
 0x1dc   :  { %507 = vst [vmem:[%s828_s5] sm:$0x1] %v504_v20 }

</bundles_post_ra>
